<compile_context>
chip_gen: v6e
topology: v6e:2x2x1
jax: 0.10.0
libtpu: 0.0.40
codegen_flags: <defaults>
</compile_context>

<pallas_src>
import functools

import jax
import jax.numpy as jnp
from jax.experimental import pallas as pl
from jax.experimental.pallas import tpu as pltpu

IN_DIM, H1, H2, OUT_DIM = 10, 20, 10, 2

# Packed-parameter layout (rows aligned to sublane multiples of 8, biases in a spare lane).
ROW_W1, ROW_W2, ROW_W3 = 0, 24, 40
BIAS_COL = 64
PACK_ROWS, PACK_COLS = 48, 128


def _mlp_kernel(p_ref, x_ref, o_ref, *, compute_dtype):
    # x_ref: [IN_DIM, bb] with batch on lanes; p_ref: [48, 128] packed params (VMEM-resident).
    x = x_ref[...]

    w1 = p_ref[ROW_W1:ROW_W1 + H1, 0:IN_DIM]                      # [20, 10]
    b1 = p_ref[ROW_W1:ROW_W1 + H1, BIAS_COL:BIAS_COL + 1]         # [20, 1]
    w2 = p_ref[ROW_W2:ROW_W2 + H2, 0:H1]                          # [10, 20]
    b2 = p_ref[ROW_W2:ROW_W2 + H2, BIAS_COL:BIAS_COL + 1]         # [10, 1]
    w3 = p_ref[ROW_W3:ROW_W3 + OUT_DIM, 0:H2]                     # [2, 10]
    b3 = p_ref[ROW_W3:ROW_W3 + OUT_DIM, BIAS_COL:BIAS_COL + 1]    # [2, 1]

    # Layers 1-2 on the MXU; operands optionally bf16, accumulation always f32.
    h1 = jnp.dot(w1.astype(compute_dtype), x.astype(compute_dtype),
                 preferred_element_type=jnp.float32) + b1
    h1 = jnp.maximum(h1, 0.0)                                     # ReLU, f32 on the VPU
    h2 = jnp.dot(w2.astype(compute_dtype), h1.astype(compute_dtype),
                 preferred_element_type=jnp.float32) + b2
    h2 = jnp.maximum(h2, 0.0)                                     # ReLU

    # Layer 3 on the VPU: 10 broadcast multiply-adds over the lane (batch) axis, b3 folded in.
    acc = b3 + w3[:, 0:1] * h2[0:1, :]
    for k in range(1, H2):
        acc = acc + w3[:, k:k + 1] * h2[k:k + 1, :]
    o_ref[...] = acc.astype(o_ref.dtype)


def _pick_block_b(batch, block_b):
    """Lane tile: multiple of 128, >= 2 grid blocks when B > 128 (v7x megacore), capped at block_b."""
    cap = 128 * max(1, int(block_b) // 128)
    if batch <= 128:
        return 128
    half = 128 * pl.cdiv(pl.cdiv(batch, 2), 128)
    return max(128, min(half, cap))


def mlp_forward_lanes(x_t, packed_params, *, block_b=2048, compute_dtype=jnp.float32):
    """Kernel-native entry point.

    x_t: [IN_DIM, B] float32 (batch on the lane axis). Returns [OUT_DIM, B] float32.
    block_b is a sweep parameter (~2048-4096 on v6e/v7x, ~512-1024 on v5e).
    No host-side padding: the Pallas grid masks the ragged tail block.
    """
    F, B = x_t.shape
    assert F == IN_DIM, F

    bb = _pick_block_b(B, block_b)
    n_blocks = pl.cdiv(B, bb)

    flops = 2 * B * (IN_DIM * H1 + H1 * H2 + H2 * OUT_DIM)
    bytes_accessed = 4 * (B * (IN_DIM + OUT_DIM) + PACK_ROWS * PACK_COLS)

    kernel = functools.partial(_mlp_kernel, compute_dtype=compute_dtype)
    return pl.pallas_call(
        kernel,
        out_shape=jax.ShapeDtypeStruct((OUT_DIM, B), jnp.float32),
        grid=(n_blocks,),
        in_specs=[
            # Constant index_map -> single ~24 KiB DMA, resident across the whole grid.
            # (Single-buffering it would save another 24 KiB of VMEM — negligible, skipped.)
            pl.BlockSpec((PACK_ROWS, PACK_COLS), lambda i: (0, 0)),
            pl.BlockSpec((IN_DIM, bb), lambda i: (0, i)),          # x tile over batch lanes
        ],
        out_specs=pl.BlockSpec((OUT_DIM, bb), lambda i: (0, i)),   # lane-dense output tile
        compiler_params=pltpu.CompilerParams(
            dimension_semantics=("parallel",),
        ),
        cost_estimate=pl.CostEstimate(
            flops=flops, transcendentals=0, bytes_accessed=bytes_accessed),
    )(packed_params, x_t)


def mlp_forward(x, packed_params, *, block_b=2048, compute_dtype=jnp.float32):
    """PyTorch-layout convenience wrapper: x [B, IN_DIM] -> [B, OUT_DIM].

    Prefer mlp_forward_lanes (activations already in [features, batch] layout) in a real
    pipeline; the two transposes here are thin relayouts outside the kernel (no zero-pad copy).
    """
    x_t = jnp.asarray(x, jnp.float32).T
    out_t = mlp_forward_lanes(x_t, packed_params, block_b=block_b, compute_dtype=compute_dtype)
    return out_t.T


def init_params(key):
    """Deterministic init mimicking torch.nn.Linear's U(-1/sqrt(fan_in), 1/sqrt(fan_in))."""
    def linear(key, fan_in, fan_out):
        kw, kb = jax.random.split(key)
        bound = 1.0 / jnp.sqrt(jnp.float32(fan_in))
        w = jax.random.uniform(kw, (fan_out, fan_in), jnp.float32, -bound, bound)
        b = jax.random.uniform(kb, (fan_out,), jnp.float32, -bound, bound)
        return w, b

    k1, k2, k3 = jax.random.split(key, 3)
    w1, b1 = linear(k1, IN_DIM, H1)
    w2, b2 = linear(k2, H1, H2)
    w3, b3 = linear(k3, H2, OUT_DIM)
    return dict(w1=w1, b1=b1, w2=w2, b2=b2, w3=w3, b3=b3)


def pack_params(p):
    """Pack all weights/biases into one pre-padded (48, 128) f32 buffer (single DMA)."""
    buf = jnp.zeros((PACK_ROWS, PACK_COLS), jnp.float32)
    buf = buf.at[ROW_W1:ROW_W1 + H1, 0:IN_DIM].set(p["w1"])
    buf = buf.at[ROW_W1:ROW_W1 + H1, BIAS_COL].set(p["b1"])
    buf = buf.at[ROW_W2:ROW_W2 + H2, 0:H1].set(p["w2"])
    buf = buf.at[ROW_W2:ROW_W2 + H2, BIAS_COL].set(p["b2"])
    buf = buf.at[ROW_W3:ROW_W3 + OUT_DIM, 0:H2].set(p["w3"])
    buf = buf.at[ROW_W3:ROW_W3 + OUT_DIM, BIAS_COL].set(p["b3"])
    return buf


def mlp_reference(x, p):
    h1 = jnp.maximum(x @ p["w1"].T + p["b1"], 0.0)
    h2 = jnp.maximum(h1 @ p["w2"].T + p["b2"], 0.0)
    return h2 @ p["w3"].T + p["b3"]


if __name__ == "__main__":
    key = jax.random.PRNGKey(0)
    kx, kx2, kp = jax.random.split(key, 3)

    params = init_params(kp)
    packed = pack_params(params)

    # Small batch (single partial block, 16 < 128 lanes).
    B = 16
    x = jax.random.normal(kx, (B, IN_DIM), jnp.float32)
    out = jax.block_until_ready(mlp_forward(x, packed))
    ref = mlp_reference(x, params)
    assert out.shape == (B, OUT_DIM), out.shape
    assert jnp.allclose(out, ref, atol=1e-5, rtol=1e-5), "mismatch vs reference (f32 path)"

    # Ragged batch (not a multiple of the lane tile) exercises the masked tail block.
    B2 = 300
    x2 = jax.random.normal(kx2, (B2, IN_DIM), jnp.float32)
    out2 = jax.block_until_ready(mlp_forward(x2, packed, block_b=256))
    ref2 = mlp_reference(x2, params)
    assert out2.shape == (B2, OUT_DIM), out2.shape
    assert jnp.allclose(out2, ref2, atol=1e-5, rtol=1e-5), "mismatch vs reference (ragged path)"

    # Optional MXU-native bf16-operand path (f32 accumulation) — looser numerics vs f32 reference.
    out_bf16 = jax.block_until_ready(mlp_forward(x, packed, compute_dtype=jnp.bfloat16))
    assert jnp.allclose(out_bf16, ref, atol=5e-2, rtol=5e-2), "mismatch vs reference (bf16 path)"

    print("KERNEL_OK")
</pallas_src>

<mosaic_0001>
module attributes {stable_mosaic.version = 11 : i64} {
  func.func @_mlp_kernel(%arg0: i32, %arg1: memref<48x128xf32, #tpu.memory_space<vmem>>, %arg2: memref<10x128xf32, #tpu.memory_space<vmem>>, %arg3: memref<2x128xf32, #tpu.memory_space<vmem>>) attributes {dimension_semantics = [#tpu.dimension_semantics<parallel>], iteration_bounds = array<i64: 1>, scalar_prefetch = 0 : i64, scratch_operands = 0 : i64, tpu.core_type = #tpu.core_type<tc>, window_params = [{pipeline_mode = #tpu.pipeline_mode<synchronous>, transform_indices = @transform_0, window_bounds = array<i64: 48, 128>}, {transform_indices = @transform_1, window_bounds = array<i64: 10, 128>}, {transform_indices = @transform_2, window_bounds = array<i64: 2, 128>}]} {
    %c0 = arith.constant 0 : index
    %c0_0 = arith.constant 0 : index
    %0 = vector.load %arg2[%c0, %c0_0] : memref<10x128xf32, #tpu.memory_space<vmem>>, vector<10x128xf32>
    %c0_1 = arith.constant 0 : index
    %c0_2 = arith.constant 0 : index
    %1 = vector.load %arg1[%c0_1, %c0_2] : memref<48x128xf32, #tpu.memory_space<vmem>>, vector<20x10xf32>
    %c0_3 = arith.constant 0 : index
    %c64 = arith.constant 64 : index
    %2 = vector.load %arg1[%c0_3, %c64] : memref<48x128xf32, #tpu.memory_space<vmem>>, vector<20x1xf32>
    %c24 = arith.constant 24 : index
    %c0_4 = arith.constant 0 : index
    %3 = vector.load %arg1[%c24, %c0_4] : memref<48x128xf32, #tpu.memory_space<vmem>>, vector<10x20xf32>
    %c24_5 = arith.constant 24 : index
    %c64_6 = arith.constant 64 : index
    %4 = vector.load %arg1[%c24_5, %c64_6] : memref<48x128xf32, #tpu.memory_space<vmem>>, vector<10x1xf32>
    %c40 = arith.constant 40 : index
    %c0_7 = arith.constant 0 : index
    %5 = vector.load %arg1[%c40, %c0_7] : memref<48x128xf32, #tpu.memory_space<vmem>>, vector<2x10xf32>
    %c40_8 = arith.constant 40 : index
    %c64_9 = arith.constant 64 : index
    %6 = vector.load %arg1[%c40_8, %c64_9] : memref<48x128xf32, #tpu.memory_space<vmem>>, vector<2x1xf32>
    %cst = arith.constant dense<0.000000e+00> : vector<20x128xf32>
    %7 = tpu.matmul %1, %0, %cst {dimension_numbers = #tpu.dot_dimension_numbers<[1], [0], [0], [1], [0, 0, 1, 1], [], []>} : vector<20x10xf32>, vector<10x128xf32>, vector<20x128xf32> -> vector<20x128xf32>
    %8 = vector.broadcast %2 : vector<20x1xf32> to vector<20x128xf32>
    %9 = arith.addf %7, %8 : vector<20x128xf32>
    %cst_10 = arith.constant 0.000000e+00 : f32
    %10 = vector.broadcast %cst_10 : f32 to vector<20x128xf32>
    %11 = arith.maximumf %9, %10 : vector<20x128xf32>
    %cst_11 = arith.constant dense<0.000000e+00> : vector<10x128xf32>
    %12 = tpu.matmul %3, %11, %cst_11 {dimension_numbers = #tpu.dot_dimension_numbers<[1], [0], [0], [1], [0, 0, 1, 1], [], []>} : vector<10x20xf32>, vector<20x128xf32>, vector<10x128xf32> -> vector<10x128xf32>
    %13 = vector.broadcast %4 : vector<10x1xf32> to vector<10x128xf32>
    %14 = arith.addf %12, %13 : vector<10x128xf32>
    %cst_12 = arith.constant 0.000000e+00 : f32
    %15 = vector.broadcast %cst_12 : f32 to vector<10x128xf32>
    %16 = arith.maximumf %14, %15 : vector<10x128xf32>
    %17 = vector.extract_strided_slice %5 {offsets = [0, 0], sizes = [2, 1], strides = [1, 1]} : vector<2x10xf32> to vector<2x1xf32>
    %18 = vector.extract_strided_slice %16 {offsets = [0, 0], sizes = [1, 128], strides = [1, 1]} : vector<10x128xf32> to vector<1x128xf32>
    %19 = vector.broadcast %17 : vector<2x1xf32> to vector<2x128xf32>
    %20 = vector.broadcast %18 : vector<1x128xf32> to vector<2x128xf32>
    %21 = arith.mulf %19, %20 : vector<2x128xf32>
    %22 = vector.broadcast %6 : vector<2x1xf32> to vector<2x128xf32>
    %23 = arith.addf %22, %21 : vector<2x128xf32>
    %24 = vector.extract_strided_slice %5 {offsets = [0, 1], sizes = [2, 1], strides = [1, 1]} : vector<2x10xf32> to vector<2x1xf32>
    %25 = vector.extract_strided_slice %16 {offsets = [1, 0], sizes = [1, 128], strides = [1, 1]} : vector<10x128xf32> to vector<1x128xf32>
    %26 = vector.broadcast %24 : vector<2x1xf32> to vector<2x128xf32>
    %27 = vector.broadcast %25 : vector<1x128xf32> to vector<2x128xf32>
    %28 = arith.mulf %26, %27 : vector<2x128xf32>
    %29 = arith.addf %23, %28 : vector<2x128xf32>
    %30 = vector.extract_strided_slice %5 {offsets = [0, 2], sizes = [2, 1], strides = [1, 1]} : vector<2x10xf32> to vector<2x1xf32>
    %31 = vector.extract_strided_slice %16 {offsets = [2, 0], sizes = [1, 128], strides = [1, 1]} : vector<10x128xf32> to vector<1x128xf32>
    %32 = vector.broadcast %30 : vector<2x1xf32> to vector<2x128xf32>
    %33 = vector.broadcast %31 : vector<1x128xf32> to vector<2x128xf32>
    %34 = arith.mulf %32, %33 : vector<2x128xf32>
    %35 = arith.addf %29, %34 : vector<2x128xf32>
    %36 = vector.extract_strided_slice %5 {offsets = [0, 3], sizes = [2, 1], strides = [1, 1]} : vector<2x10xf32> to vector<2x1xf32>
    %37 = vector.extract_strided_slice %16 {offsets = [3, 0], sizes = [1, 128], strides = [1, 1]} : vector<10x128xf32> to vector<1x128xf32>
    %38 = vector.broadcast %36 : vector<2x1xf32> to vector<2x128xf32>
    %39 = vector.broadcast %37 : vector<1x128xf32> to vector<2x128xf32>
    %40 = arith.mulf %38, %39 : vector<2x128xf32>
    %41 = arith.addf %35, %40 : vector<2x128xf32>
    %42 = vector.extract_strided_slice %5 {offsets = [0, 4], sizes = [2, 1], strides = [1, 1]} : vector<2x10xf32> to vector<2x1xf32>
    %43 = vector.extract_strided_slice %16 {offsets = [4, 0], sizes = [1, 128], strides = [1, 1]} : vector<10x128xf32> to vector<1x128xf32>
    %44 = vector.broadcast %42 : vector<2x1xf32> to vector<2x128xf32>
    %45 = vector.broadcast %43 : vector<1x128xf32> to vector<2x128xf32>
    %46 = arith.mulf %44, %45 : vector<2x128xf32>
    %47 = arith.addf %41, %46 : vector<2x128xf32>
    %48 = vector.extract_strided_slice %5 {offsets = [0, 5], sizes = [2, 1], strides = [1, 1]} : vector<2x10xf32> to vector<2x1xf32>
    %49 = vector.extract_strided_slice %16 {offsets = [5, 0], sizes = [1, 128], strides = [1, 1]} : vector<10x128xf32> to vector<1x128xf32>
    %50 = vector.broadcast %48 : vector<2x1xf32> to vector<2x128xf32>
    %51 = vector.broadcast %49 : vector<1x128xf32> to vector<2x128xf32>
    %52 = arith.mulf %50, %51 : vector<2x128xf32>
    %53 = arith.addf %47, %52 : vector<2x128xf32>
    %54 = vector.extract_strided_slice %5 {offsets = [0, 6], sizes = [2, 1], strides = [1, 1]} : vector<2x10xf32> to vector<2x1xf32>
    %55 = vector.extract_strided_slice %16 {offsets = [6, 0], sizes = [1, 128], strides = [1, 1]} : vector<10x128xf32> to vector<1x128xf32>
    %56 = vector.broadcast %54 : vector<2x1xf32> to vector<2x128xf32>
    %57 = vector.broadcast %55 : vector<1x128xf32> to vector<2x128xf32>
    %58 = arith.mulf %56, %57 : vector<2x128xf32>
    %59 = arith.addf %53, %58 : vector<2x128xf32>
    %60 = vector.extract_strided_slice %5 {offsets = [0, 7], sizes = [2, 1], strides = [1, 1]} : vector<2x10xf32> to vector<2x1xf32>
    %61 = vector.extract_strided_slice %16 {offsets = [7, 0], sizes = [1, 128], strides = [1, 1]} : vector<10x128xf32> to vector<1x128xf32>
    %62 = vector.broadcast %60 : vector<2x1xf32> to vector<2x128xf32>
    %63 = vector.broadcast %61 : vector<1x128xf32> to vector<2x128xf32>
    %64 = arith.mulf %62, %63 : vector<2x128xf32>
    %65 = arith.addf %59, %64 : vector<2x128xf32>
    %66 = vector.extract_strided_slice %5 {offsets = [0, 8], sizes = [2, 1], strides = [1, 1]} : vector<2x10xf32> to vector<2x1xf32>
    %67 = vector.extract_strided_slice %16 {offsets = [8, 0], sizes = [1, 128], strides = [1, 1]} : vector<10x128xf32> to vector<1x128xf32>
    %68 = vector.broadcast %66 : vector<2x1xf32> to vector<2x128xf32>
    %69 = vector.broadcast %67 : vector<1x128xf32> to vector<2x128xf32>
    %70 = arith.mulf %68, %69 : vector<2x128xf32>
    %71 = arith.addf %65, %70 : vector<2x128xf32>
    %72 = vector.extract_strided_slice %5 {offsets = [0, 9], sizes = [2, 1], strides = [1, 1]} : vector<2x10xf32> to vector<2x1xf32>
    %73 = vector.extract_strided_slice %16 {offsets = [9, 0], sizes = [1, 128], strides = [1, 1]} : vector<10x128xf32> to vector<1x128xf32>
    %74 = vector.broadcast %72 : vector<2x1xf32> to vector<2x128xf32>
    %75 = vector.broadcast %73 : vector<1x128xf32> to vector<2x128xf32>
    %76 = arith.mulf %74, %75 : vector<2x128xf32>
    %77 = arith.addf %71, %76 : vector<2x128xf32>
    %c0_13 = arith.constant 0 : index
    %c0_14 = arith.constant 0 : index
    %78 = vector.load %arg3[%c0_13, %c0_14] : memref<2x128xf32, #tpu.memory_space<vmem>>, vector<2x128xf32>
    tpu.vector_store %arg3[%c0_13, %c0_14], %77 {strides = array<i32>} : memref<2x128xf32, #tpu.memory_space<vmem>>, vector<2x128xf32>,
    return
  }
  func.func @transform_0(%arg0: i32) -> (i32, i32) {
    %c0_i32 = arith.constant 0 : i32
    %c0_i32_0 = arith.constant 0 : i32
    %c0_i32_1 = arith.constant 0 : i32
    return %c0_i32, %c0_i32_0 : i32, i32
  }
  func.func @transform_1(%arg0: i32) -> (i32, i32) {
    %c0_i32 = arith.constant 0 : i32
    %c0_i32_0 = arith.constant 0 : i32
    return %c0_i32, %arg0 : i32, i32
  }
  func.func @transform_2(%arg0: i32) -> (i32, i32) {
    %c0_i32 = arith.constant 0 : i32
    %c0_i32_0 = arith.constant 0 : i32
    return %c0_i32, %arg0 : i32, i32
  }
}

</mosaic_0001>

<bundles_post_ra>
// kernel: tpu_custom_call.1
= control target key start
LH: loop header
LB: loop body
LE: loop exit
PB: predicated region body
PF: predicated region fallthrough
CT: control target
= control target key end

     0   :  { %7 = vsyncpa [#allocation3], 0  ;;  %s562_s0 = inlined_call_operand.hbm [shape: f32[48,128], index: 0, kind: input, shape index: {}]   ;;  %s563_s1 = inlined_call_operand.hbm [shape: f32[10,16], index: 1, kind: input, shape index: {}]   ;;  %s564_s2 = inlined_call_operand.hbm [shape: f32[2,16], index: 2, kind: output, shape index: {}]  }
   0x1   :  { %8 = vsyncpa [#allocation6], 0 }
   0x2   :  { %9 = vsyncpa [#allocation4], 0  ;;  %s512_s9 = smov [#allocation2]  }
   0x3   :  { %s15_s10 = sshll.u32 %s512_s9, 4  ;;  %s16_s10 = int_to_ptr.vmem [resolvable:$true] %s15_s10 }
   0x4   :  { %s454_s11 = scalar_lea.vmem %s16_s10, 768  ;;  %p459_p1 = scmp.lt.s32.totalorder %s16_s10, %s16_s10 }
   0x5   :  { %p455_p0 = scmp.ne.s32.totalorder %s16_s10, %s454_s11  ;;  %p460_p2 = scmp.lt.s32.totalorder %s454_s11, %s454_s11 }
   0x7   :  { %p461_p3 = por %p460_p2, %p459_p1 }
   0x9   :  { %p462_p4 = pnand %p461_p3, %p455_p0 }
   0xb   :  { %465 = shalt.err (!%p462_p4)
}
   0xc   :  { %s513_s12 = smov 128   ;;  %s514_s13 = smov 8  }
   0xd   :  { %21 = dma.hbm_to_vmem [thread:$0]  %s562_s0, 768, %s16_s10, [#allocation3], %s513_s12, %s513_s12, %s514_s13  }
   0xe   :  { %s515_s16 = smov [#allocation5]  }
   0xf   :  { %s27_s17 = sshll.u32 %s515_s16, 4  ;;  %s28_s17 = int_to_ptr.vmem [resolvable:$true] %s27_s17 }
  0x10   :  { %s474_s18 = scalar_lea.vmem %s28_s17, 256  ;;  %p479_p6 = scmp.lt.s32.totalorder %s28_s17, %s28_s17 }
  0x11   :  { %p475_p5 = scmp.ne.s32.totalorder %s28_s17, %s474_s18  ;;  %p480_p7 = scmp.lt.s32.totalorder %s474_s18, %s474_s18 }
  0x13   :  { %p481_p8 = por %p480_p7, %p479_p6 }
  0x15   :  { %p482_p9 = pnand %p481_p8, %p475_p5 }
  0x17   :  { %485 = shalt.err (!%p482_p9)
}
  0x18   :  { %33 = dma.hbm_to_vmem [thread:$0]  %s563_s1, 256, %s28_s17, [#allocation6], %s513_s12, %s513_s12, %s514_s13  }
  0x19   :  { %506 = dma.done.wait [#allocation3], 768  }
  0x1a   :  { %507 = vsyncadd [#allocation3], 4294966528 }
  0x1b   :  { %508 = dma.done.wait [#allocation6], 256  }
  0x1c   :  { %509 = vsyncadd [#allocation6], 4294967040  ;;  %v516_v0 = vmov 0.0   ;;  %vm517_vm0 = vmmov 0   ;;  %v518_v1 = vmov 64   ;;  %vm70_vm1 = vcmask 1041408  }
  0x1d   :  { %392 = vmatprep.subr.mxu0 %v516_v0  ;;  %396 = vmatprep.mubr.msk.f32.mxu0 %vm517_vm0, %v516_v0  ;;  %v41_v2 = vld [vmem:[#allocation5 + $0x8] sm:$0x3]  ;;  %v40_v3 = vld [vmem:[#allocation5] sm:$0xff]  ;;  %v42_v4 = vld [vmem:[#allocation2] sm:$0xff]  ;;  %vm63_vm2 = vcmask 80896   ;;  %vm167_vm3 = vcmask 162816   ;;  %v258_v39 = vlaneseq }
  0x1e   :  { %433 = vset.pattern.permute.xlu1 %v518_v1  ;;  %432 = vset.pattern.permute.xlu0 %v518_v1  ;;  %v44_v5 = vld [vmem:[#allocation2 + $0x10] sm:$0xf]  ;;  %v45_v6 = vld [vmem:[#allocation2 + $0x18] sm:$0xff]  ;;  %v43_v7 = vld [vmem:[#allocation2 + $0x8] sm:$0xff]  ;;  %v519_v9 = vmov 1   ;;  %v520_v10 = vmov 0  }
  0x1f   :  { %393 = vmatpush3.msk.msra.mxu0 %vm70_vm1, %v41_v2  ;;  %50 = vperm.xlu1 %433, %v42_v4   ;;  %v47_v8 = vld [vmem:[#allocation2 + $0x28] sm:$0x3]  ;;  %v521_v11 = vmov 3   ;;  %v522_v12 = vmov 2   ;;  %v46_v13 = vld [vmem:[#allocation2 + $0x20] sm:$0x3] }
  0x20   :  { %394 = vmatprep.subr.mxu0 %v516_v0  ;;  %60 = vperm.xlu0 %432, %v44_v5   ;;  %v523_v14 = vmov 4   ;;  %v524_v15 = vmov 5   ;;  %v525_v16 = vmov 7   ;;  %v526_v17 = vmov 6   ;;  %s529_s0 = smov [#allocation7]  }
  0x21   :  { %395 = vmatpush3.msra.mxu0 %v40_v3  ;;  %411 = vmatprep.mubr.msk.f32.mxu1 %vm167_vm3, %v45_v6  ;;  %v527_v18 = vmov 9   ;;  %v528_v19 = vmov 8   ;;  %vm172_vm4 = vcmask 1043456   ;;  %v259_v43 = vshrl.u32 %v258_v39, 7  ;;  %s365_s1 = sshll.u32 %s529_s0, 4  ;;  %s366_s1 = int_to_ptr.vmem [resolvable:$true] %s365_s1 }
  0x22   :  { %397 = vmatmul.mubr.msk.f32.vlgmr.msra.gmra.mxu0 %vm63_vm2, %v42_v4  ;;  %s486_s21 = scalar_lea.vmem %s366_s1, 32  ;;  %p491_p11 = scmp.lt.s32.totalorder %s366_s1, %s366_s1 }
  0x23   :  { %399 = vmatprep.mubr.msk.f32.mxu0 %vm517_vm0, %v516_v0  ;;  %159 = vperm.xlu1 %433, %v45_v6   ;;  %v260_v47 = vsub.s32 0, %v259_v43  ;;  %v274_v49 = vsub.s32 1, %v259_v43  ;;  %v284_v50 = vsub.s32 2, %v259_v43  ;;  %v294_v54 = vsub.s32 3, %v259_v43  ;;  %p487_p10 = scmp.ne.s32.totalorder %s366_s1, %s486_s21  ;;  %p492_p12 = scmp.lt.s32.totalorder %s486_s21, %s486_s21 }
  0x24   :  { %55 = vperm.xlu0 %432, %v43_v7   ;;  %v304_v56 = vsub.s32 4, %v259_v43  ;;  %v314_v61 = vsub.s32 5, %v259_v43 }
  0x25   :  { %p493_p13 = por %p492_p12, %p491_p11 }
  0x26   :  { %400 = vmatmul.mubr.msk.f32.gmra.mxu0 %vm63_vm2, %v43_v7 }
  0x27   :  { %402 = vmatprep.mubr.msk.f32.mxu0 %vm517_vm0, %v516_v0  ;;  %264 = vperm.xlu1 %433, %v47_v8   ;;  %v324_v0 = vsub.s32 6, %v259_v43  ;;  %p494_p0 = pnand %p493_p13, %p487_p10 }
  0x28   :  { %434 = vset.pattern.permute.xlu0 %v520_v10 }
  0x29   :  { %255 = vperm.xlu0 %434, %v47_v8  }
  0x2a   :  { %403 = vmatmul.mubr.msk.f32.gmra.mxu0 %vm63_vm2, %v44_v5  ;;  %v334_v5 = vsub.s32 7, %v259_v43 }
  0x2b   :  { %435 = vset.pattern.permute.xlu1 %v519_v9 }
  0x2c   :  { %269 = vperm.xlu1 %435, %v47_v8  }
  0x2d   :  { %436 = vset.pattern.permute.xlu0 %v522_v12 }
  0x2e   :  { %279 = vperm.xlu0 %436, %v47_v8  }
  0x30   :  { %437 = vset.pattern.permute.xlu1 %v521_v11 }
  0x31   :  { %289 = vperm.xlu1 %437, %v47_v8  }
  0x32   :  { %439 = vset.pattern.permute.xlu0 %v518_v1 }
  0x33   :  { %164 = vperm.xlu0 %439, %v46_v13  }
  0x35   :  { %438 = vset.pattern.permute.xlu1 %v523_v14 }
  0x36   :  { %299 = vperm.xlu1 %438, %v47_v8  }
  0x37   :  { %442 = vset.pattern.permute.xlu0 %v525_v16 }
  0x38   :  { %329 = vperm.xlu0 %442, %v47_v8  }
  0x3a   :  { %440 = vset.pattern.permute.xlu1 %v524_v15 }
  0x3b   :  { %309 = vperm.xlu1 %440, %v47_v8  }
  0x3c   :  { %445 = vset.pattern.permute.xlu0 %v527_v18 }
  0x3f   :  { %441 = vset.pattern.permute.xlu1 %v526_v17 }
  0x40   :  { %319 = vperm.xlu1 %441, %v47_v8  }
  0x44   :  { %443 = vset.pattern.permute.xlu1 %v528_v19 }
  0x45   :  { %339 = vperm.xlu1 %443, %v47_v8  }
  0x49   :  { %444 = vset.pattern.permute.xlu1 %v527_v18 }
  0x4a   :  { %349 = vperm.xlu1 %444, %v47_v8  }
  0x9a   :  { %v51_v26 = vpop.permute.xlu1 %50 }
  0x9b   :  { %v61_v20 = vpop.permute.xlu0 %60 }
  0x9e   :  { %v160_v35 = vpop.permute.xlu1 %159 }
  0x9f   :  { %v56_v24 = vpop.permute.xlu0 %55 }
  0xa2   :  { %v265_v36 = vpop.permute.xlu1 %264 }
  0xa4   :  { %v256_v40 = vpop.permute.xlu0 %255 }
  0xa7   :  { %v270_v37 = vpop.permute.xlu1 %269 }
  0xa9   :  { %v280_v46 = vpop.permute.xlu0 %279 }
  0xac   :  { %v290_v38 = vpop.permute.xlu1 %289 }
  0xae   :  { %v165_v58 = vpop.permute.xlu0 %164 }
  0xb1   :  { %v300_v41 = vpop.permute.xlu1 %299 }
  0xb3   :  { %v330_v17 = vpop.permute.xlu0 %329 }
  0xb6   :  { %v310_v51 = vpop.permute.xlu1 %309 }
  0xbb   :  { %v320_v63 = vpop.permute.xlu1 %319 }
  0xe2   :  { %v140_v21 = vpop.f32.mrf.mxu0 }
  0xe3   :  { %v141_v31 = vadd.f32 %v140_v21, %v51_v26 }
  0xe4   :  { %v398_v22 = vpop.f32.mrf.mxu0 }
  0xe5   :  { %v154_v34 = vmax.f32 %v141_v31, 0.0 }
  0xe6   :  { %v145_v23 = vpop.f32.mrf.mxu0 }
  0xe7   :  { %v146_v28 = vadd.f32 %v145_v23, %v56_v24 }
  0xe8   :  { %v401_v25 = vpop.f32.mrf.mxu0 }
  0xe9   :  { %v155_v33 = vmax.f32 %v146_v28, 0.0 }
  0xea   :  { %v150_v27 = vpop.f32.mrf.mxu0 }
  0xeb   :  { %v151_v29 = vadd.f32 %v150_v27, %v61_v20 }
  0xec   :  { %v404_v30 = vpop.f32.mrf.mxu0 }
  0xed   :  { %v156_v32 = vmax.f32 %v151_v29, 0.0 }
  0xef   :  { %405 = vmatprep.subr.msk.mxu1 %vm172_vm4, %v156_v32 }
  0xf0   :  { %406 = vmatpush3.msk.msra.mxu1 %vm172_vm4, %v156_v32 }
  0xf1   :  { %407 = vmatprep.subr.mxu1 %v155_v33 }
  0xf2   :  { %408 = vmatpush3.msra.mxu1 %v155_v33 }
  0xf3   :  { %409 = vmatprep.subr.mxu1 %v154_v34 }
  0xf4   :  { %410 = vmatpush3.msra.mxu1 %v154_v34 }
  0xf5   :  { %412 = vmatmul.mubr.msk.f32.vlgmr.msra.gmra.mxu1 %vm167_vm3, %v46_v13  ;;  %v340_v13 = vpop.permute.xlu1 %339 }
  0xf9   :  { %v350_v24 = vpop.permute.xlu1 %349 }
 0x1b5   :  { %v413_v42 = vpop.f32.mrf.mxu1 }
 0x1b6   :  { %v248_v1 = vadd.f32 %v413_v42, %v165_v58 }
 0x1b7   :  { %v242_v44 = vpop.f32.mrf.mxu1 }
 0x1b8   :  { %v243_v45 = vadd.f32 %v242_v44, %v160_v35  ;;  %v252_v9 = vmax.f32 %v248_v1, 0.0 }
 0x1ba   :  { %v251_v48 = vmax.f32 %v243_v45, 0.0  ;;  %v345_v18 = vrot.slane %v252_v9, %v260_v47  ;;  %v355_v21 = vrot.slane %v252_v9, %v274_v49 }
 0x1bc   :  { %v261_v52 = vrot.slane %v251_v48, %v260_v47  ;;  %v275_v53 = vrot.slane %v251_v48, %v274_v49  ;;  %v285_v57 = vrot.slane %v251_v48, %v284_v50  ;;  %v295_v62 = vrot.slane %v251_v48, %v294_v54 }
 0x1bd   :  { %v305_v4 = vrot.slane %v251_v48, %v304_v56  ;;  %v315_v8 = vrot.slane %v251_v48, %v314_v61  ;;  %v325_v12 = vrot.slane %v251_v48, %v324_v0  ;;  %v335_v16 = vrot.slane %v251_v48, %v334_v5 }
 0x1be   :  { %v262_v55 = vmul.f32 %v261_v52, %v256_v40  ;;  %v276_v60 = vmul.f32 %v275_v53, %v270_v37  ;;  %v286_v3 = vmul.f32 %v285_v57, %v280_v46  ;;  %v296_v7 = vmul.f32 %v295_v62, %v290_v38 }
 0x1bf   :  { %v306_v11 = vmul.f32 %v305_v4, %v300_v41  ;;  %v316_v15 = vmul.f32 %v315_v8, %v310_v51  ;;  %v326_v20 = vmul.f32 %v325_v12, %v320_v63  ;;  %v336_v23 = vmul.f32 %v335_v16, %v330_v17 }
 0x1c0   :  { %v267_v59 = vadd.f32 %v265_v36, %v262_v55  ;;  %v346_v25 = vmul.f32 %v345_v18, %v340_v13  ;;  %v356_v27 = vmul.f32 %v355_v21, %v350_v24 }
 0x1c2   :  { %v277_v2 = vadd.f32 %v276_v60, %v267_v59 }
 0x1c4   :  { %v287_v6 = vadd.f32 %v286_v3, %v277_v2 }
 0x1c6   :  { %v297_v10 = vadd.f32 %v296_v7, %v287_v6 }
 0x1c8   :  { %v307_v14 = vadd.f32 %v306_v11, %v297_v10 }
 0x1ca   :  { %v317_v19 = vadd.f32 %v316_v15, %v307_v14 }
 0x1cc   :  { %v327_v22 = vadd.f32 %v326_v20, %v317_v19 }
 0x1ce   :  { %v337_v26 = vadd.f32 %v336_v23, %v327_v22 }
 0x1d0   :  { %v347_v28 = vadd.f32 %v346_v25, %v337_v26 }
 0x1d2   :  { %v357_v29 = vadd.f32 %v356_v27, %v347_v28 }
 0x1d4   :  { %358 = vst [vmem:[#allocation7] sm:$0x3] %v357_v29 }
 0x1d5   :  { %497 = shalt.err (!%p494_p0)
}
 0x1d6   :  { %368 = dma.vmem_to_hbm [thread:$0]  %s366_s1, 32, %s564_s2, [#allocation4]  }
 0x1d7   :  { %510 = dma.done.wait [#allocation4], 32  }
 0x1d8   :  { %511 = vsyncadd [#allocation4], 4294967264 }
 0x1d9   :  { %372 = vsyncpa [#allocation3], 1 }
 0x1da   :  { %373 = vsyncpa [#allocation6], 1 }
 0x1db   :  { %374 = vsyncpa [#allocation4], 1 }

</bundles_post_ra>
